<compile_context>
chip_gen: v6e
topology: v6e:2x2x1
jax: 0.10.0
libtpu: 0.0.40
codegen_flags: <defaults>
</compile_context>

<pallas_src>
import jax
import jax.numpy as jnp
from jax.experimental import pallas as pl
from jax.experimental.pallas import tpu as pltpu


# ----------------------------------------------------------------------------
# Helpers
# ----------------------------------------------------------------------------
def _round_up(n, m):
    return ((n + m - 1) // m) * m


def _tile(n, target, align):
    """Largest divisor of n that is <= target and a multiple of `align`.
    The wrapper pads n to a multiple of `align` first, so this always
    terminates with an aligned tile (worst case `align` itself or n)."""
    if n <= target:
        return n
    t = (target // align) * align
    while t >= align:
        if n % t == 0:
            return t
        t -= align
    return n


def _vmem_limit(tm, tk, tn, cbytes, out_dtype, with_acc):
    """Explicit scoped-VMEM budget: double-buffered tiles + optional f32 acc,
    with headroom, never below the default and capped below v7x physical."""
    obytes = jnp.dtype(out_dtype).itemsize
    need = 2 * (tm * tk * cbytes + tk * tn * cbytes + tn * 4 + tm * tn * obytes)
    if with_acc:
        need += tm * tn * 4
    return int(min(max(need + (8 << 20), 32 << 20), 48 << 20))


# ----------------------------------------------------------------------------
# Kernels
# ----------------------------------------------------------------------------
def _linear_resident_kernel(x_ref, w_ref, b_ref, o_ref):
    """Whole (padded) weight is VMEM-resident: one MXU matmul per (tm, N)
    output block, bias fused into the write-out. No accumulator scratch."""
    acc = jnp.dot(x_ref[...], w_ref[...], preferred_element_type=jnp.float32)
    o_ref[...] = (acc + b_ref[...].astype(jnp.float32)).astype(o_ref.dtype)


def _linear_tiled_kernel(x_ref, w_ref, b_ref, o_ref, acc_ref):
    """General path: reduce over the K grid axis (last grid dim) into an f32
    accumulator scratch; bias fused at the final K step."""
    k = pl.program_id(2)

    @pl.when(k == 0)
    def _():
        acc_ref[...] = jnp.zeros_like(acc_ref)

    acc_ref[...] += jnp.dot(
        x_ref[...], w_ref[...], preferred_element_type=jnp.float32
    )

    @pl.when(k == pl.num_programs(2) - 1)
    def _():
        o_ref[...] = (acc_ref[...] + b_ref[...].astype(jnp.float32)).astype(o_ref.dtype)


# ----------------------------------------------------------------------------
# Wrapper
# ----------------------------------------------------------------------------
def linear_forward(x, weight, bias, horizon, context=None,
                   compute_dtype=jnp.bfloat16):
    """
    x      : (B, dim, lag)
    weight : (horizon*dim, lag*dim)   (PyTorch nn.Linear layout)
    bias   : (horizon*dim,)
    returns: (B, dim, horizon).  `context` is ignored (as in the reference).

    compute_dtype=bf16 runs the MXU at full rate with f32 accumulation
    (precision tradeoff vs. the f32 PyTorch reference).
    """
    B, dim, lag = x.shape
    K = dim * lag
    N = weight.shape[0]
    assert weight.shape == (horizon * dim, K)
    assert bias.shape == (N,)
    out_dtype = x.dtype

    # Layout plumbing (matches torch row-major .view) + bf16 operand cast.
    x2 = x.reshape(B, K).astype(compute_dtype)
    w2 = weight.T.astype(compute_dtype)          # (K, N)
    b2 = bias.reshape(1, N).astype(jnp.float32)  # bias added in f32

    cbytes = jnp.dtype(compute_dtype).itemsize
    sub_align = 8 if cbytes == 4 else (16 if cbytes == 2 else 32)

    # Zero-pad to hardware-friendly multiples: lane dims (K, N) to 128,
    # sublane dim (M) to the packed-sublane multiple of the compute dtype.
    # Zero padding keeps the matmul exact; padded rows/cols are cropped after.
    Mp = _round_up(B, sub_align)
    Kp = _round_up(K, 128)
    Np = _round_up(N, 128)
    if (Mp, Kp) != (B, K):
        x2 = jnp.pad(x2, ((0, Mp - B), (0, Kp - K)))
    if (Kp, Np) != (K, N):
        w2 = jnp.pad(w2, ((0, Kp - K), (0, Np - N)))
    if Np != N:
        b2 = jnp.pad(b2, ((0, 0), (0, Np - N)))

    # Large M tile: amortizes weight re-streaming and per-grid-step overhead.
    tm = _tile(Mp, 512, sub_align)

    cost = pl.CostEstimate(
        flops=2 * Mp * Kp * Np,
        transcendentals=0,
        bytes_accessed=(Mp * Kp + Kp * Np) * cbytes
        + Np * 4
        + Mp * Np * jnp.dtype(out_dtype).itemsize,
    )

    # --- Fast path: keep the whole weight resident in VMEM ------------------
    # (typical forecasting-linear shapes: K = dim*lag, N = horizon*dim modest)
    weight_resident_budget = 12 * 1024 * 1024  # per buffer; x2 for double-buffer
    if Kp * Np * cbytes <= weight_resident_budget:
        grid = (Mp // tm,)
        out_padded = pl.pallas_call(
            _linear_resident_kernel,
            out_shape=jax.ShapeDtypeStruct((Mp, Np), out_dtype),
            grid_spec=pltpu.PrefetchScalarGridSpec(
                num_scalar_prefetch=0,
                grid=grid,
                in_specs=[
                    pl.BlockSpec((tm, Kp), lambda i: (i, 0)),   # activations
                    pl.BlockSpec((Kp, Np), lambda i: (0, 0)),   # resident weight
                    pl.BlockSpec((1, Np), lambda i: (0, 0)),    # bias
                ],
                out_specs=pl.BlockSpec((tm, Np), lambda i: (i, 0)),
            ),
            compiler_params=pltpu.CompilerParams(
                dimension_semantics=("parallel",),
                vmem_limit_bytes=_vmem_limit(tm, Kp, Np, cbytes, out_dtype,
                                             with_acc=False),
            ),
            cost_estimate=cost,
        )(x2, w2, b2)
    else:
        # --- General tiled path with K reduction -----------------------------
        tn = _tile(Np, 512, 128)
        tk = _tile(Kp, 512, 128)
        grid = (Mp // tm, Np // tn, Kp // tk)
        out_padded = pl.pallas_call(
            _linear_tiled_kernel,
            out_shape=jax.ShapeDtypeStruct((Mp, Np), out_dtype),
            grid_spec=pltpu.PrefetchScalarGridSpec(
                num_scalar_prefetch=0,
                grid=grid,
                in_specs=[
                    pl.BlockSpec((tm, tk), lambda i, j, k: (i, k)),  # activations
                    pl.BlockSpec((tk, tn), lambda i, j, k: (k, j)),  # weights
                    pl.BlockSpec((1, tn), lambda i, j, k: (0, j)),   # bias
                ],
                out_specs=pl.BlockSpec((tm, tn), lambda i, j, k: (i, j)),
                scratch_shapes=[pltpu.VMEM((tm, tn), jnp.float32)],
            ),
            compiler_params=pltpu.CompilerParams(
                dimension_semantics=("parallel", "parallel", "arbitrary"),
                vmem_limit_bytes=_vmem_limit(tm, tk, tn, cbytes, out_dtype,
                                             with_acc=True),
            ),
            cost_estimate=cost,
        )(x2, w2, b2)

    out2 = out_padded[:B, :N]
    return out2.reshape(B, dim, horizon)


# ----------------------------------------------------------------------------
# Self-test
# ----------------------------------------------------------------------------
if __name__ == "__main__":
    key = jax.random.PRNGKey(0)
    B, dim, lag, horizon = 2, 4, 8, 8
    K, N = dim * lag, horizon * dim

    kx, kw, kb = jax.random.split(key, 3)
    x = jax.random.normal(kx, (B, dim, lag), dtype=jnp.float32)
    weight = jax.random.normal(kw, (N, K), dtype=jnp.float32) * 0.1
    bias = jax.random.normal(kb, (N,), dtype=jnp.float32) * 0.1

    out = linear_forward(x, weight, bias, horizon)
    out = jax.block_until_ready(out)

    # Pure-JAX f32 reference (mirrors torch: view -> x @ W.T + b -> view).
    # Kernel uses bf16 operands with f32 accumulation, so tolerance is loosened.
    ref = (x.reshape(B, K) @ weight.T + bias).reshape(B, dim, horizon)

    assert out.shape == (B, dim, horizon)
    assert jnp.allclose(out, ref, atol=5e-2, rtol=5e-2), "mismatch vs reference"

    print("KERNEL_OK")
</pallas_src>

<mosaic_0001>
module attributes {stable_mosaic.version = 11 : i64} {
  func.func @_linear_resident_kernel(%arg0: i32, %arg1: memref<16x128xbf16, #tpu.memory_space<vmem>>, %arg2: memref<128x128xbf16, #tpu.memory_space<vmem>>, %arg3: memref<1x128xf32, #tpu.memory_space<vmem>>, %arg4: memref<16x128xf32, #tpu.memory_space<vmem>>) attributes {dimension_semantics = [#tpu.dimension_semantics<parallel>], iteration_bounds = array<i64: 1>, scalar_prefetch = 0 : i64, scratch_operands = 0 : i64, tpu.core_type = #tpu.core_type<tc>, window_params = [{transform_indices = @transform_0, window_bounds = array<i64: 16, 128>}, {pipeline_mode = #tpu.pipeline_mode<synchronous>, transform_indices = @transform_1, window_bounds = array<i64: 128, 128>}, {pipeline_mode = #tpu.pipeline_mode<synchronous>, transform_indices = @transform_2, window_bounds = array<i64: 1, 128>}, {transform_indices = @transform_3, window_bounds = array<i64: 16, 128>}]} {
    %c0 = arith.constant 0 : index
    %c0_0 = arith.constant 0 : index
    %0 = vector.load %arg1[%c0, %c0_0] : memref<16x128xbf16, #tpu.memory_space<vmem>>, vector<16x128xbf16>
    %c0_1 = arith.constant 0 : index
    %c0_2 = arith.constant 0 : index
    %1 = vector.load %arg2[%c0_1, %c0_2] : memref<128x128xbf16, #tpu.memory_space<vmem>>, vector<128x128xbf16>
    %cst = arith.constant dense<0.000000e+00> : vector<16x128xf32>
    %2 = tpu.matmul %0, %1, %cst {dimension_numbers = #tpu.dot_dimension_numbers<[1], [0], [0], [1], [0, 0, 1, 1], [], []>} : vector<16x128xbf16>, vector<128x128xbf16>, vector<16x128xf32> -> vector<16x128xf32>
    %c0_3 = arith.constant 0 : index
    %c0_4 = arith.constant 0 : index
    %3 = vector.load %arg3[%c0_3, %c0_4] : memref<1x128xf32, #tpu.memory_space<vmem>>, vector<1x128xf32>
    %4 = vector.broadcast %3 : vector<1x128xf32> to vector<16x128xf32>
    %5 = arith.addf %2, %4 : vector<16x128xf32>
    %c0_5 = arith.constant 0 : index
    %c0_6 = arith.constant 0 : index
    %6 = vector.load %arg4[%c0_5, %c0_6] : memref<16x128xf32, #tpu.memory_space<vmem>>, vector<16x128xf32>
    tpu.vector_store %arg4[%c0_5, %c0_6], %5 {strides = array<i32>} : memref<16x128xf32, #tpu.memory_space<vmem>>, vector<16x128xf32>,
    return
  }
  func.func @transform_0(%arg0: i32) -> (i32, i32) {
    %c0_i32 = arith.constant 0 : i32
    %c0_i32_0 = arith.constant 0 : i32
    return %arg0, %c0_i32 : i32, i32
  }
  func.func @transform_1(%arg0: i32) -> (i32, i32) {
    %c0_i32 = arith.constant 0 : i32
    %c0_i32_0 = arith.constant 0 : i32
    %c0_i32_1 = arith.constant 0 : i32
    return %c0_i32, %c0_i32_0 : i32, i32
  }
  func.func @transform_2(%arg0: i32) -> (i32, i32) {
    %c0_i32 = arith.constant 0 : i32
    %c0_i32_0 = arith.constant 0 : i32
    %c0_i32_1 = arith.constant 0 : i32
    return %c0_i32, %c0_i32_0 : i32, i32
  }
  func.func @transform_3(%arg0: i32) -> (i32, i32) {
    %c0_i32 = arith.constant 0 : i32
    %c0_i32_0 = arith.constant 0 : i32
    return %arg0, %c0_i32 : i32, i32
  }
}

</mosaic_0001>

<bundles_post_ra>
// kernel: tpu_custom_call.1
= control target key start
LH: loop header
LB: loop body
LE: loop exit
PB: predicated region body
PF: predicated region fallthrough
CT: control target
= control target key end

     0   :  { %8 = vsyncpa [#allocation3], 0  ;;  %s348_s0 = inlined_call_operand.hbm [shape: bf16[16,128], index: 0, kind: input, shape index: {}]   ;;  %s349_s1 = inlined_call_operand.hbm [shape: bf16[128,128], index: 1, kind: input, shape index: {}]   ;;  %s350_s2 = inlined_call_operand.vmem [shape: f32[1,128], index: 2, kind: input, shape index: {}]   ;;  %s351_s3 = inlined_call_operand.hbm [shape: f32[16,128], index: 3, kind: output, shape index: {}]  }
   0x1   :  { %9 = vsyncpa [#allocation6], 0 }
   0x2   :  { %10 = vsyncpa [#allocation4], 0  ;;  %s307_s12 = smov [#allocation2]  }
   0x3   :  { %s16_s13 = sshll.u32 %s307_s12, 4  ;;  %s17_s13 = int_to_ptr.vmem [resolvable:$true] %s16_s13 }
   0x4   :  { %s249_s14 = scalar_lea.vmem %s17_s13, 128  ;;  %p254_p1 = scmp.lt.s32.totalorder %s17_s13, %s17_s13 }
   0x5   :  { %p250_p0 = scmp.ne.s32.totalorder %s17_s13, %s249_s14  ;;  %p255_p2 = scmp.lt.s32.totalorder %s249_s14, %s249_s14 }
   0x7   :  { %p256_p3 = por %p255_p2, %p254_p1 }
   0x9   :  { %p257_p4 = pnand %p256_p3, %p250_p0 }
   0xb   :  { %260 = shalt.err (!%p257_p4)
}
   0xc   :  { %s308_s15 = smov 64   ;;  %s309_s16 = smov 4  }
   0xd   :  { %22 = dma.hbm_to_vmem [thread:$0]  %s348_s0, 128, %s17_s13, [#allocation3], %s308_s15, %s308_s15, %s309_s16  }
   0xe   :  { %s310_s19 = smov [#allocation5]  }
   0xf   :  { %s28_s20 = sshll.u32 %s310_s19, 4  ;;  %s29_s20 = int_to_ptr.vmem [resolvable:$true] %s28_s20 }
  0x10   :  { %s269_s21 = scalar_lea.vmem %s29_s20, 1024  ;;  %p274_p6 = scmp.lt.s32.totalorder %s29_s20, %s29_s20 }
  0x11   :  { %p270_p5 = scmp.ne.s32.totalorder %s29_s20, %s269_s21  ;;  %p275_p7 = scmp.lt.s32.totalorder %s269_s21, %s269_s21 }
  0x13   :  { %p276_p8 = por %p275_p7, %p274_p6 }
  0x15   :  { %p277_p9 = pnand %p276_p8, %p270_p5 }
  0x17   :  { %280 = shalt.err (!%p277_p9)
}
  0x18   :  { %34 = dma.hbm_to_vmem [thread:$0]  %s349_s1, 1024, %s29_s20, [#allocation6], %s308_s15, %s308_s15, %s309_s16  }
  0x19   :  { %301 = dma.done.wait [#allocation3], 128  }
  0x1a   :  { %302 = vsyncadd [#allocation3], 4294967168 }
  0x1b   :  { %303 = dma.done.wait [#allocation6], 1024  }
  0x1c   :  { %304 = vsyncadd [#allocation6], 4294966272  ;;  %v311_v0 = vmov 0.0   ;;  %vm312_vm0 = vmmov 0   ;;  %v232_v1 = vld [vmem:[#allocation5 + $0x38] sm:$0xff]   ;;  %v233_v2 = vld [vmem:[#allocation5 + $0x30] sm:$0xff]  }
  0x1d   :  { %203 = vmatprep.subr.bf16.mxu0 %v311_v0  ;;  %219 = vmatprep.mubr.msk.bf16.mxu0 %vm312_vm0, %v311_v0  ;;  %v234_v3 = vld [vmem:[#allocation5 + $0x28] sm:$0xff]   ;;  %v235_v4 = vld [vmem:[#allocation5 + $0x20] sm:$0xff]   ;;  %v236_v5 = vld [vmem:[#allocation5 + $0x18] sm:$0xff]   ;;  %s313_s24 = smov [#allocation7]  }
  0x1e   :  { %204 = vmatpush3.bf16.msra.mxu0 %v232_v1  ;;  %v237_v6 = vld [vmem:[#allocation5 + $0x10] sm:$0xff]   ;;  %v238_v7 = vld [vmem:[#allocation5 + $0x8] sm:$0xff]   ;;  %v239_v8 = vld [vmem:[#allocation5] sm:$0xff]   ;;  %s171_s25 = sshll.u32 %s313_s24, 4  ;;  %s172_s25 = int_to_ptr.vmem [resolvable:$true] %s171_s25 }
  0x1f   :  { %205 = vmatprep.subr.bf16.mxu0 %v311_v0  ;;  %v240_v9 = vld [vmem:[#allocation2] sm:$0xff]   ;;  %s281_s26 = scalar_lea.vmem %s172_s25, 256  ;;  %p286_p11 = scmp.lt.s32.totalorder %s172_s25, %s172_s25 }
  0x20   :  { %v184_v10 = vld [vmem:[%s350_s2] ss:$0 sm:$0xff]  ;;  %p282_p10 = scmp.ne.s32.totalorder %s172_s25, %s281_s26  ;;  %p287_p12 = scmp.lt.s32.totalorder %s281_s26, %s281_s26 }
  0x22   :  { %206 = vmatpush3.bf16.msra.mxu0 %v233_v2  ;;  %p288_p13 = por %p287_p12, %p286_p11 }
  0x23   :  { %207 = vmatprep.subr.bf16.mxu0 %v311_v0 }
  0x24   :  { %p289_p0 = pnand %p288_p13, %p282_p10 }
  0x26   :  { %208 = vmatpush3.bf16.msra.mxu0 %v234_v3 }
  0x27   :  { %209 = vmatprep.subr.bf16.mxu0 %v311_v0 }
  0x2a   :  { %210 = vmatpush3.bf16.msra.mxu0 %v235_v4 }
  0x2b   :  { %211 = vmatprep.subr.bf16.mxu0 %v311_v0 }
  0x2e   :  { %212 = vmatpush3.bf16.msra.mxu0 %v236_v5 }
  0x2f   :  { %213 = vmatprep.subr.bf16.mxu0 %v311_v0 }
  0x32   :  { %214 = vmatpush3.bf16.msra.mxu0 %v237_v6 }
  0x33   :  { %215 = vmatprep.subr.bf16.mxu0 %v311_v0 }
  0x36   :  { %216 = vmatpush3.bf16.msra.mxu0 %v238_v7 }
  0x37   :  { %217 = vmatprep.subr.bf16.mxu0 %v311_v0 }
  0x3a   :  { %218 = vmatpush3.bf16.msra.mxu0 %v239_v8 }
  0x3d   :  { %220 = vmatmul.mubr.bf16.vlgmr.msra.gmra.mxu0 %v240_v9 }
  0xfd   :  { %v157_v11 = vpop.f32.mrf.mxu0 }
  0xfe   :  { %v158_v12 = vadd.f32 %v184_v10, %v157_v11 }
  0xff   :  { %v221_v13 = vpop.f32.mrf.mxu0 }
 0x100   :  { %164 = vst [vmem:[#allocation7] sm:$0xff] %v158_v12 }
 0x101   :  { %v160_v14 = vpop.f32.mrf.mxu0 }
 0x102   :  { %v161_v15 = vadd.f32 %v184_v10, %v160_v14 }
 0x103   :  { %v222_v16 = vpop.f32.mrf.mxu0 }
 0x104   :  { %165 = vst [vmem:[#allocation7 + $0x8] sm:$0xff] %v161_v15 }
 0x105   :  { %292 = shalt.err (!%p289_p0)
}
 0x106   :  { %s314_s27 = smov 128   ;;  %s315_s2 = smov 8  }
 0x107   :  { %177 = dma.vmem_to_hbm [thread:$0]  %s172_s25, 256, %s351_s3, [#allocation4], %s314_s27, %s314_s27, %s315_s2  }
 0x108   :  { %305 = dma.done.wait [#allocation4], 256  }
 0x109   :  { %306 = vsyncadd [#allocation4], 4294967040 }
 0x10a   :  { %181 = vsyncpa [#allocation3], 1 }
 0x10b   :  { %182 = vsyncpa [#allocation6], 1 }
 0x10c   :  { %183 = vsyncpa [#allocation4], 1 }

</bundles_post_ra>
